<compile_context>
chip_gen: v7x
topology: tpu7x:2x2x1
jax: 0.10.0
libtpu: 0.0.40
codegen_flags: <defaults>
</compile_context>

<pallas_src>
import functools

import numpy as np
import jax
import jax.numpy as jnp
from jax import lax
from jax.experimental import pallas as pl
from jax.experimental.pallas import tpu as pltpu

_LANE = 128


def _vmem_capacity_bytes():
    try:
        info = pltpu.get_tpu_info()
        cap = getattr(info, "vmem_capacity_bytes", None)
        if cap:
            return int(cap)
    except Exception:
        pass
    return 64 << 20  # conservative: smallest current-gen (v7x) VMEM


def _round_up(x, m):
    return ((x + m - 1) // m) * m


# --------------------- fused kernel: whole rows resident ---------------------
def _fused_kernel(x_ref, g_ref, b_ref, o_ref, *, eps):
    # x_ref: (TC, N) full rows; g_ref/b_ref: (TC, 1) float32 params.
    x = x_ref[...].astype(jnp.float32)
    mean = jnp.mean(x, axis=1, keepdims=True)
    xc = x - mean
    var = jnp.mean(xc * xc, axis=1, keepdims=True)          # unbiased=False
    inv = lax.rsqrt(var + eps)                               # EUP slot
    o_ref[...] = (xc * (g_ref[...] * inv) + b_ref[...]).astype(o_ref.dtype)


# ------------------- two-pass kernel: tiled over C and N ---------------------
def _ntiled_kernel(x_ref, g_ref, b_ref, o_ref, sum_ref, sq_ref, *,
                   eps, n_total, tn):
    p = pl.program_id(1)      # 0 = accumulate stats, 1 = normalize
    j = pl.program_id(2)      # N-tile index

    @pl.when(jnp.logical_and(p == 0, j == 0))
    def _():
        sum_ref[...] = jnp.zeros_like(sum_ref)
        sq_ref[...] = jnp.zeros_like(sq_ref)

    @pl.when(p == 0)
    def _():
        x = x_ref[...].astype(jnp.float32)
        if n_total % tn != 0:
            # Mask the ragged trailing lanes of the last N tile.
            lane = lax.broadcasted_iota(jnp.int32, x.shape, 1)
            x = jnp.where(lane + j * tn < n_total, x, 0.0)
        sum_ref[...] += jnp.sum(x, axis=1, keepdims=True)
        sq_ref[...] += jnp.sum(x * x, axis=1, keepdims=True)

    @pl.when(p == 1)
    def _():
        x = x_ref[...].astype(jnp.float32)
        inv_n = 1.0 / n_total
        mean = sum_ref[...] * inv_n
        var = jnp.maximum(sq_ref[...] * inv_n - mean * mean, 0.0)
        inv = lax.rsqrt(var + eps)
        o_ref[...] = ((x - mean) * (g_ref[...] * inv)
                      + b_ref[...]).astype(o_ref.dtype)


def sparse_group_norm(values, gamma, beta=None, *, eps=1e-5,
                      max_block_bytes=None):
    """Pallas equivalent of SparseGroupNorm(...).forward(sparse_tensor).

    `values`: (C, N) dense values of the sparse tensor (C = num_channels =
    num_groups, N = number of stored entries per channel).
    `max_block_bytes` is a test/tuning hook overriding the per-block budget.
    """
    C, N = values.shape
    dtype = values.dtype
    itemsize = jnp.dtype(dtype).itemsize

    # Parameters stay float32 end-to-end (matches the f32 nn.Parameter).
    g2 = gamma.astype(jnp.float32).reshape(C, 1)
    if beta is None:                                   # affine=False path
        b2 = jnp.zeros((C, 1), dtype=jnp.float32)
    else:
        b2 = beta.astype(jnp.float32).reshape(C, 1)

    # dtype-aware sublane alignment: 8 rows f32, 16 bf16, 32 int8/fp8.
    sub_align = 8 * max(1, 4 // itemsize)
    row_bytes = N * itemsize

    # Generation-aware VMEM budgets.
    vmem_cap = _vmem_capacity_bytes()
    vmem_limit = int(min(vmem_cap * 3 // 4, 64 << 20))   # 48 MiB v7x, 64 MiB v5e/v6e
    # Each grid step holds ~6-8x the block bytes (in/out double buffers plus
    # the f32 upcast / centered temporaries), so cap blocks at limit/8 and
    # target ~1-2 MiB per buffer (>= ~85% of HBM roofline, many grid steps).
    block_cap = vmem_limit // 8
    target_block = min(2 << 20, block_cap)
    if max_block_bytes is not None:
        block_cap = target_block = int(max_block_bytes)

    min_fused_rows = C if C <= sub_align else sub_align
    fused_feasible = min_fused_rows * row_bytes <= block_cap
    # Use the two-pass N-tiled path when full rows can't stay resident, or when
    # C is too small to split but the single fused block would be large
    # (a one-step grid has zero DMA/compute overlap).
    use_ntiled = (not fused_feasible) or (
        C <= sub_align and C * row_bytes > 2 * target_block)

    out_shape = jax.ShapeDtypeStruct((C, N), dtype)
    flops = 8 * C * N

    if not use_ntiled:
        # ------------------ fused path: grid over channel tiles ------------------
        if C <= sub_align:
            tc = C                                      # block dim == full dim
        else:
            tc_budget = max(sub_align,
                            (target_block // max(1, row_bytes))
                            // sub_align * sub_align)
            tc_steps = _round_up(pl.cdiv(C, 8), sub_align)   # aim ~8 grid steps
            tc = max(sub_align, min(tc_budget, tc_steps))
            if tc >= C:
                tc = C
        grid = (pl.cdiv(C, tc),)

        grid_spec = pltpu.PrefetchScalarGridSpec(
            num_scalar_prefetch=0,
            grid=grid,
            in_specs=[
                pl.BlockSpec((tc, N), lambda i: (i, 0)),     # values rows
                pl.BlockSpec((tc, 1), lambda i: (i, 0)),     # gamma (f32)
                pl.BlockSpec((tc, 1), lambda i: (i, 0)),     # beta  (f32)
            ],
            out_specs=pl.BlockSpec((tc, N), lambda i: (i, 0)),
        )
        return pl.pallas_call(
            functools.partial(_fused_kernel, eps=eps),
            out_shape=out_shape,
            grid_spec=grid_spec,
            compiler_params=pltpu.CompilerParams(
                dimension_semantics=("parallel",),           # rows independent
                vmem_limit_bytes=vmem_limit,
            ),
            cost_estimate=pl.CostEstimate(
                flops=flops, transcendentals=C,
                bytes_accessed=2 * C * N * itemsize),
        )(values, g2, b2)

    # -------------- two-pass N-tiled path: grid (C tiles, pass, N tiles) --------------
    tc = C if C <= sub_align else sub_align
    tn_budget = max(_LANE,
                    (target_block // max(1, tc * itemsize)) // _LANE * _LANE)
    tn_steps = _round_up(pl.cdiv(N, 8), _LANE)               # aim ~8 N tiles
    tn = max(_LANE, min(tn_budget, tn_steps))
    if tn >= N:
        tn = N
    grid = (pl.cdiv(C, tc), 2, pl.cdiv(N, tn))

    grid_spec = pltpu.PrefetchScalarGridSpec(
        num_scalar_prefetch=0,
        grid=grid,
        in_specs=[
            pl.BlockSpec((tc, tn), lambda i, p, j: (i, j)),
            pl.BlockSpec((tc, 1), lambda i, p, j: (i, 0)),
            pl.BlockSpec((tc, 1), lambda i, p, j: (i, 0)),
        ],
        # During the stats pass (p == 0) the output window is pinned to (i, 0)
        # so its block index never changes -> no garbage writeback; it is then
        # written at (p == 1, j == 0), the last step of its index run.
        out_specs=pl.BlockSpec((tc, tn), lambda i, p, j: (i, j * p)),
        scratch_shapes=[pltpu.VMEM((tc, 1), jnp.float32),    # per-channel sum
                        pltpu.VMEM((tc, 1), jnp.float32)],   # per-channel sum(x^2)
    )
    return pl.pallas_call(
        functools.partial(_ntiled_kernel, eps=eps, n_total=N, tn=tn),
        out_shape=out_shape,
        grid_spec=grid_spec,
        compiler_params=pltpu.CompilerParams(
            dimension_semantics=("parallel", "arbitrary", "arbitrary"),
            vmem_limit_bytes=vmem_limit,
        ),
        cost_estimate=pl.CostEstimate(
            flops=flops, transcendentals=C,
            bytes_accessed=3 * C * N * itemsize),
    )(values, g2, b2)


def _reference(values, gamma, beta, eps):
    v = values.astype(jnp.float32)
    mean = jnp.mean(v, axis=1, keepdims=True)
    var = jnp.mean((v - mean) ** 2, axis=1, keepdims=True)
    out = gamma[:, None].astype(jnp.float32) * (v - mean) / jnp.sqrt(var + eps)
    if beta is not None:
        out = out + beta[:, None].astype(jnp.float32)
    return out.astype(values.dtype)


if __name__ == "__main__":
    key = jax.random.PRNGKey(0)
    ks = jax.random.split(key, 10)
    eps = 1e-5

    # 1) Module-like small shape: num_groups == num_channels == 4, 256 nnz/channel.
    C, N = 4, 256
    values = jax.random.normal(ks[0], (C, N), dtype=jnp.float32)
    gamma = 1.0 + 0.1 * jax.random.normal(ks[1], (C,), dtype=jnp.float32)
    beta = 0.1 * jax.random.normal(ks[2], (C,), dtype=jnp.float32)
    out = jax.block_until_ready(sparse_group_norm(values, gamma, beta, eps=eps))
    np.testing.assert_allclose(np.asarray(out),
                               np.asarray(_reference(values, gamma, beta, eps)),
                               rtol=1e-5, atol=1e-5)

    # affine=False path (no beta).
    out = jax.block_until_ready(sparse_group_norm(values, gamma, None, eps=eps))
    np.testing.assert_allclose(np.asarray(out),
                               np.asarray(_reference(values, gamma, None, eps)),
                               rtol=1e-5, atol=1e-5)

    # 2) Fused path with multiple grid steps (C > sublane alignment).
    C, N = 32, 512
    values = jax.random.normal(ks[3], (C, N), dtype=jnp.float32)
    gamma = 1.0 + 0.1 * jax.random.normal(ks[4], (C,), dtype=jnp.float32)
    beta = 0.1 * jax.random.normal(ks[5], (C,), dtype=jnp.float32)
    out = jax.block_until_ready(sparse_group_norm(values, gamma, beta, eps=eps))
    np.testing.assert_allclose(np.asarray(out),
                               np.asarray(_reference(values, gamma, beta, eps)),
                               rtol=1e-5, atol=1e-5)

    # 3) Two-pass N-tiled path (forced via a tiny block budget), with ragged
    #    C (12 % 8 != 0) and ragged N (1000 % 128 != 0) to exercise masking.
    C, N = 12, 1000
    values = jax.random.normal(ks[6], (C, N), dtype=jnp.float32)
    gamma = 1.0 + 0.1 * jax.random.normal(ks[7], (C,), dtype=jnp.float32)
    beta = 0.1 * jnp.cos(jnp.arange(C, dtype=jnp.float32))
    out = jax.block_until_ready(
        sparse_group_norm(values, gamma, beta, eps=eps, max_block_bytes=4096))
    np.testing.assert_allclose(np.asarray(out),
                               np.asarray(_reference(values, gamma, beta, eps)),
                               rtol=1e-4, atol=1e-4)

    # 4) bf16 values with f32 parameters (dtype-aware alignment, f32 params).
    C, N = 16, 384
    values = jax.random.normal(ks[8], (C, N), dtype=jnp.float32).astype(jnp.bfloat16)
    gamma = 1.0 + 0.1 * jax.random.normal(ks[9], (C,), dtype=jnp.float32)
    beta = 0.05 * jnp.sin(jnp.arange(C, dtype=jnp.float32))
    out = jax.block_until_ready(sparse_group_norm(values, gamma, beta, eps=eps))
    np.testing.assert_allclose(np.asarray(out, dtype=np.float32),
                               np.asarray(_reference(values, gamma, beta, eps),
                                          dtype=np.float32),
                               rtol=5e-2, atol=5e-2)

    print("KERNEL_OK")
</pallas_src>

<mosaic_0001>
module attributes {stable_mosaic.version = 11 : i64} {
  func.func @_fused_kernel(%arg0: i32, %arg1: memref<4x256xf32, #tpu.memory_space<vmem>>, %arg2: memref<4x1xf32, #tpu.memory_space<vmem>>, %arg3: memref<4x1xf32, #tpu.memory_space<vmem>>, %arg4: memref<4x256xf32, #tpu.memory_space<vmem>>) attributes {dimension_semantics = [#tpu.dimension_semantics<parallel>], iteration_bounds = array<i64: 1>, scalar_prefetch = 0 : i64, scratch_operands = 0 : i64, tpu.core_type = #tpu.core_type<tc>, window_params = [{transform_indices = @transform_0, window_bounds = array<i64: 4, 256>}, {transform_indices = @transform_1, window_bounds = array<i64: 4, 1>}, {transform_indices = @transform_2, window_bounds = array<i64: 4, 1>}, {transform_indices = @transform_3, window_bounds = array<i64: 4, 256>}]} {
    %c0 = arith.constant 0 : index
    %c0_0 = arith.constant 0 : index
    %0 = vector.load %arg1[%c0, %c0_0] : memref<4x256xf32, #tpu.memory_space<vmem>>, vector<4x256xf32>
    %cst = arith.constant dense<0.000000e+00> : vector<4xf32>
    %1 = vector.multi_reduction <add>, %0, %cst [1] : vector<4x256xf32> to vector<4xf32>
    %2 = vector.shape_cast %1 : vector<4xf32> to vector<4x1xf32>
    %cst_1 = arith.constant 2.560000e+02 : f32
    %3 = vector.broadcast %cst_1 : f32 to vector<4x1xf32>
    %4 = arith.divf %2, %3 : vector<4x1xf32>
    %5 = vector.broadcast %4 : vector<4x1xf32> to vector<4x256xf32>
    %6 = arith.subf %0, %5 : vector<4x256xf32>
    %7 = arith.mulf %6, %6 : vector<4x256xf32>
    %cst_2 = arith.constant dense<0.000000e+00> : vector<4xf32>
    %8 = vector.multi_reduction <add>, %7, %cst_2 [1] : vector<4x256xf32> to vector<4xf32>
    %9 = vector.shape_cast %8 : vector<4xf32> to vector<4x1xf32>
    %cst_3 = arith.constant 2.560000e+02 : f32
    %10 = vector.broadcast %cst_3 : f32 to vector<4x1xf32>
    %11 = arith.divf %9, %10 : vector<4x1xf32>
    %cst_4 = arith.constant 9.99999974E-6 : f32
    %12 = vector.broadcast %cst_4 : f32 to vector<4x1xf32>
    %13 = arith.addf %11, %12 : vector<4x1xf32>
    %14 = math.rsqrt %13 : vector<4x1xf32>
    %c0_5 = arith.constant 0 : index
    %c0_6 = arith.constant 0 : index
    %15 = vector.load %arg2[%c0_5, %c0_6] : memref<4x1xf32, #tpu.memory_space<vmem>>, vector<4x1xf32>
    %16 = arith.mulf %15, %14 : vector<4x1xf32>
    %17 = vector.broadcast %16 : vector<4x1xf32> to vector<4x256xf32>
    %18 = arith.mulf %6, %17 : vector<4x256xf32>
    %c0_7 = arith.constant 0 : index
    %c0_8 = arith.constant 0 : index
    %19 = vector.load %arg3[%c0_7, %c0_8] : memref<4x1xf32, #tpu.memory_space<vmem>>, vector<4x1xf32>
    %20 = vector.broadcast %19 : vector<4x1xf32> to vector<4x256xf32>
    %21 = arith.addf %18, %20 : vector<4x256xf32>
    %c0_9 = arith.constant 0 : index
    %c0_10 = arith.constant 0 : index
    %22 = vector.load %arg4[%c0_9, %c0_10] : memref<4x256xf32, #tpu.memory_space<vmem>>, vector<4x256xf32>
    tpu.vector_store %arg4[%c0_9, %c0_10], %21 {strides = array<i32>} : memref<4x256xf32, #tpu.memory_space<vmem>>, vector<4x256xf32>,
    return
  }
  func.func @transform_0(%arg0: i32) -> (i32, i32) {
    %c0_i32 = arith.constant 0 : i32
    %c0_i32_0 = arith.constant 0 : i32
    return %arg0, %c0_i32 : i32, i32
  }
  func.func @transform_1(%arg0: i32) -> (i32, i32) {
    %c0_i32 = arith.constant 0 : i32
    %c0_i32_0 = arith.constant 0 : i32
    return %arg0, %c0_i32 : i32, i32
  }
  func.func @transform_2(%arg0: i32) -> (i32, i32) {
    %c0_i32 = arith.constant 0 : i32
    %c0_i32_0 = arith.constant 0 : i32
    return %arg0, %c0_i32 : i32, i32
  }
  func.func @transform_3(%arg0: i32) -> (i32, i32) {
    %c0_i32 = arith.constant 0 : i32
    %c0_i32_0 = arith.constant 0 : i32
    return %arg0, %c0_i32 : i32, i32
  }
}

</mosaic_0001>

<bundles_post_ra>
// kernel: tpu_custom_call.1
= control target key start
LH: loop header
LB: loop body
LE: loop exit
PB: predicated region body
PF: predicated region fallthrough
CT: control target
= control target key end

     0   :  { %vm19_vm0 = vcmask 1043456   ;;  %s173_s0 = inlined_call_operand.vmem [shape: f32[4,256], index: 0, kind: input, shape index: {}]   ;;  %s174_s1 = inlined_call_operand.vmem [shape: f32[4,1], index: 1, kind: input, shape index: {}]   ;;  %s175_s2 = inlined_call_operand.vmem [shape: f32[4,1], index: 2, kind: input, shape index: {}]   ;;  %s176_s3 = inlined_call_operand.hbm [shape: f32[4,256], index: 3, kind: output, shape index: {}]  }
   0x1   :  { %v15_v0 = vld [vmem:[%s173_s0] sm:$0xff] }
   0x2   :  { %8 = vsyncpa [#allocation3], 0  ;;  %v17_v1 = vcombine.high %v15_v0, %v15_v0  ;;  %v20_v2 = vsel %vm19_vm0, %v15_v0, 0.0  ;;  %v125_v5 = vmov 839922192   ;;  %v31_v7 = vlaneseq  ;;  %s127_s17 = smov [#allocation2]  }
   0x3   :  { %v29_v6 = vunpack.c.l.s4 %v125_v5  ;;  %v126_v20 = vmov 0   ;;  %v49_v24 = vld [vmem:[%s174_s1] sm:$0xf]  ;;  %s85_s18 = sshll.u32 %s127_s17, 4  ;;  %s86_s18 = int_to_ptr.vmem [resolvable:$true] %s85_s18 }
   0x4   :  { %v21_v3 = vsel %vm19_vm0, %v17_v1, 0.0  ;;  %v32_v9 = vshrl.u32 %v31_v7, 7  ;;  %96 = vset.pattern.permute.xlu1 %v126_v20  ;;  %97 = vset.pattern.permute.xlu0 %v126_v20  ;;  %v64_v27 = vld [vmem:[%s175_s2] sm:$0xf]  ;;  %s101_s19 = scalar_lea.vmem %s86_s18, 128  ;;  %p106_p1 = scmp.lt.s32.totalorder %s86_s18, %s86_s18 }
   0x5   :  { %v22_v4 = vadd.f32 %v21_v3, %v20_v2  ;;  %v30_v8 = vunpack.c.0.s8 %v29_v6  ;;  %p102_p0 = scmp.ne.s32.totalorder %s86_s18, %s101_s19  ;;  %p107_p2 = scmp.lt.s32.totalorder %s101_s19, %s101_s19 }
   0x7   :  { %23 = vadd.xlane.f32.xlu0 %v22_v4  ;;  %v33_v10 = vsub.s32 %v30_v8, %v32_v9  ;;  %p108_p3 = por %p107_p2, %p106_p1 }
   0x9   :  { %p109_p4 = pnand %p108_p3, %p102_p0 }
  0x94   :  { %v24_v11 = vpop.xlane.xlu0 %23 }
  0x95   :  { %v26_v12 = vmul.f32 0.00390625, %v24_v11 }
  0x97   :  { %v34_v13 = vrot.slane %v26_v12, %v33_v10 }
  0x99   :  { %v36_v14 = vsub.f32 %v15_v0, %v34_v13 }
  0x9b   :  { %v37_v15 = vmul.f32 %v36_v14, %v36_v14 }
  0x9d   :  { %v39_v16 = vcombine.high %v37_v15, %v37_v15  ;;  %v41_v17 = vsel %vm19_vm0, %v37_v15, 0.0 }
  0x9f   :  { %v42_v18 = vsel %vm19_vm0, %v39_v16, 0.0 }
  0xa0   :  { %v43_v19 = vadd.f32 %v42_v18, %v41_v17 }
  0xa2   :  { %44 = vadd.xlane.f32.xlu0 %v43_v19 }
 0x12f   :  { %v45_v21 = vpop.xlane.xlu0 %44 }
 0x130   :  { %v46_v22 = vmul.f32 0.00390625, %v45_v21 }
 0x132   :  { %v47_v23 = vadd.f32 1e-05, %v46_v22 }
 0x134   :  { %99 = vrsqrt.f32 %v47_v23 }
 0x13e   :  { %v100_v25 = vpop.eup %99 }
 0x13f   :  { %v50_v26 = vmul.f32 %v100_v25, %v49_v24 }
 0x141   :  { %53 = vperm.xlu1 %96, %v50_v26  }
 0x145   :  { %67 = vperm.xlu1 %96, %v64_v27  }
 0x1c0   :  { %v54_v28 = vpop.permute.xlu1 %53 }
 0x1c1   :  { %v61_v29 = vrot.slane %v54_v28, %v33_v10 }
 0x1c3   :  { %v63_v31 = vmul.f32 %v61_v29, %v36_v14 }
 0x1c4   :  { %v68_v30 = vpop.permute.xlu1 %67 }
 0x1c5   :  { %v75_v32 = vrot.slane %v68_v30, %v33_v10 }
 0x1c7   :  { %v77_v33 = vadd.f32 %v75_v32, %v63_v31 }
 0x1c9   :  { %78 = vst [vmem:[#allocation2] sm:$0xff] %v77_v33 }
 0x1ca   :  { %112 = shalt.err (!%p109_p4)
}
 0x1cb   :  { %s113_s20 = scalar_lea.hbm %s176_s3, 128 }
 0x1cc   :  { %p114_p5 = scmp.ne.s32.totalorder %s176_s3, %s113_s20  ;;  %p117_p6 = scmp.lt.u32.totalorder %s113_s20, %s176_s3 }
 0x1ce   :  { %p119_p7 = pnand %p117_p6, %p114_p5 }
 0x1d0   :  { %122 = shalt.err (!%p119_p7)
}
 0x1d1   :  { %88 = dma.vmem_to_hbm [thread:$0]  %s86_s18, 128, %s176_s3, [#allocation3]  }
 0x1d2   :  { %123 = dma.done.wait [#allocation3], 128  }
 0x1d3   :  { %124 = vsyncadd [#allocation3], 4294967168 }
 0x1d4   :  { %92 = vsyncpa [#allocation3], 1 }

</bundles_post_ra>
